<compile_context>
chip_gen: v5e
topology: v5e:2x2
jax: 0.10.0
libtpu: 0.0.40
codegen_flags: <defaults>
</compile_context>

<pallas_src>
import functools

import jax
import jax.numpy as jnp
from jax import lax
from jax.experimental import pallas as pl
from jax.experimental.pallas import tpu as pltpu

LANES = 128                  # lane width (fast axis)
SUBLANES = 8                 # sublanes per f32 vreg
SUB_ROWS = 256               # inner accumulation chunk: bounds live ranges
TARGET_TILE_BYTES = 1 << 20  # ~1 MiB of HBM bytes per input per grid step


def _sublane_multiple(dtype):
    # Second-minor tiling requirement scales with sublane packing:
    # 4-byte -> 8, 2-byte -> 16, 1-byte -> 32.
    return SUBLANES * max(1, 4 // jnp.dtype(dtype).itemsize)


def _focal_loss_kernel(pred_ref, mask_ref, out_ref, *, gamma, alpha, numel,
                       block_rows, sub_rows, needs_mask):
    n_chunks = block_rows // sub_rows
    tile_base = pl.program_id(0) * (block_rows * LANES)

    if needs_mask:
        # Local element index within a sub-chunk; hoisted once per grid step.
        lidx = (lax.broadcasted_iota(jnp.int32, (sub_rows, LANES), 0) * LANES
                + lax.broadcasted_iota(jnp.int32, (sub_rows, LANES), 1))

    def chunk_partial(r0):
        x = pred_ref[pl.ds(r0, sub_rows), :].astype(jnp.float32)
        m = mask_ref[pl.ds(r0, sub_rows), :].astype(jnp.float32)

        # Stable log-sigmoid: one exp + one log per element.
        neg_abs = -jnp.abs(x)
        e = jnp.exp(neg_abs)                       # EUP
        d = 1.0 + e
        l1p = jnp.log(d)                           # EUP (== log1p(e), e <= 1)
        r = pl.reciprocal(d, approx=True)          # EUP (cheap)
        r = r * (2.0 - d * r)                      # Newton refine (VPU)

        is_pos = x >= 0.0
        er = e * r
        p = jnp.where(is_pos, r, er)               # sigmoid(x)
        one_m_p = jnp.where(is_pos, er, r)         # 1 - sigmoid(x)
        log_p = jnp.minimum(x, 0.0) - l1p          # log(sigmoid(x))
        log_1mp = -jnp.maximum(x, 0.0) - l1p       # log(1 - sigmoid(x))

        # Trace-time gamma special-casing keeps the EUP off the critical slot.
        if gamma == 2.0:
            w_pos = one_m_p * one_m_p
            w_neg = p * p
        elif gamma == 1.0:
            w_pos = one_m_p
            w_neg = p
        elif gamma == 0.0:
            w_pos = None
            w_neg = None
        else:
            # Reuse the logs already computed: 2 extra EUP exps, not 4 ops.
            w_pos = jnp.exp(gamma * log_1mp)
            w_neg = jnp.exp(gamma * log_p)

        pos_term = ((-alpha) * m) * log_p
        neg_term = ((alpha - 1.0) * (1.0 - m)) * log_1mp
        if gamma != 0.0:
            pos_term = pos_term * w_pos
            neg_term = neg_term * w_neg
        loss = pos_term + neg_term

        if needs_mask:
            # Cheap ragged/pad mask: one scalar remainder per chunk, one
            # compare + select per element (only emitted for ragged shapes).
            rem = numel - (tile_base + r0 * LANES)
            loss = jnp.where(lidx < rem, loss, 0.0)

        # Per-vreg partial sums (pure VALU adds; reshape splits on an (8,128)
        # tile boundary, so it is free).
        return jnp.sum(loss.reshape(sub_rows // SUBLANES, SUBLANES, LANES),
                       axis=0)

    acc = chunk_partial(0)
    if n_chunks > 1:
        def body(i, acc):
            r0 = pl.multiple_of(i * sub_rows, sub_rows)
            return acc + chunk_partial(r0)
        acc = lax.fori_loop(1, n_chunks, body, acc, unroll=True)
    out_ref[...] = acc


def focal_loss(pred, mask, gamma=2.0, alpha=0.25):
    assert pred.shape == mask.shape, "pred and mask should have the same shape."
    numel = pred.size

    min_br = max(_sublane_multiple(pred.dtype), _sublane_multiple(mask.dtype))

    flat_pred = pred.reshape(-1)
    flat_mask = mask.reshape(-1)

    # Pad only to a lane multiple (no-op for typical image shapes), with a
    # small floor so tiny inputs still satisfy the sublane tiling requirement.
    padded = max(-(-numel // LANES) * LANES, min_br * LANES)
    pad = padded - numel
    if pad:
        flat_pred = jnp.pad(flat_pred, (0, pad))
        flat_mask = jnp.pad(flat_mask, (0, pad))
    rows = padded // LANES

    # Per-input tile targets ~1 MiB of the widest streamed dtype.
    itemsize = max(jnp.dtype(pred.dtype).itemsize, jnp.dtype(mask.dtype).itemsize)
    max_rows = max(min_br, TARGET_TILE_BYTES // (LANES * itemsize))
    block_rows = min(max_rows, rows)
    block_rows = max(min_br, (block_rows // min_br) * min_br)

    # Keep >= 2 grid steps when possible so the "parallel" axis can shard
    # across both v7x TensorCores.
    if rows >= 2 * min_br:
        half = -(-rows // 2)
        half = -(-half // min_br) * min_br
        block_rows = min(block_rows, half)

    # Inner accumulation chunking (bounds vreg/VMEM live ranges).
    if block_rows >= SUB_ROWS:
        block_rows = (block_rows // SUB_ROWS) * SUB_ROWS
        sub_rows = SUB_ROWS
    else:
        sub_rows = block_rows
    assert block_rows % sub_rows == 0 and sub_rows % SUBLANES == 0

    n_tiles = pl.cdiv(rows, block_rows)
    needs_mask = (n_tiles * block_rows * LANES) != numel

    pred2d = flat_pred.reshape(rows, LANES)
    mask2d = flat_mask.reshape(rows, LANES)

    kernel = functools.partial(
        _focal_loss_kernel,
        gamma=float(gamma), alpha=float(alpha), numel=numel,
        block_rows=block_rows, sub_rows=sub_rows, needs_mask=needs_mask)

    in_spec = pl.BlockSpec((block_rows, LANES), lambda i: (i, 0))
    out_spec = pl.BlockSpec((SUBLANES, LANES), lambda i: (i, 0))

    partials = pl.pallas_call(
        kernel,
        out_shape=jax.ShapeDtypeStruct((n_tiles * SUBLANES, LANES), jnp.float32),
        grid_spec=pltpu.PrefetchScalarGridSpec(
            num_scalar_prefetch=0,
            grid=(n_tiles,),
            in_specs=[in_spec, in_spec],
            out_specs=out_spec,
        ),
        compiler_params=pltpu.CompilerParams(
            dimension_semantics=("parallel",),
            # 2 inputs x 2 buffers x ~1 MiB tiles + kernel temporaries, with
            # headroom; v5e's scoped default is only 16 MiB.
            vmem_limit_bytes=32 * 1024 * 1024,
        ),
    )(pred2d, mask2d)

    # Tiny final cross-lane reduce + mean in XLA.  num_pos + num_neg ==
    # sum(mask) + (numel - sum(mask)) == numel identically, so the reference's
    # denominator is exactly the element count plus eps.
    total = jnp.sum(partials, dtype=jnp.float32)
    return total / (jnp.float32(numel) + jnp.float32(1e-07))


def _focal_loss_ref(pred, mask, gamma=2.0, alpha=0.25):
    p = jax.nn.sigmoid(pred.astype(jnp.float32))
    mask = mask.astype(jnp.float32)
    num_pos = jnp.sum(mask)
    num_neg = mask.size - num_pos
    w_pos = (1.0 - p) ** gamma
    w_neg = p ** gamma
    loss_pos = -alpha * mask * w_pos * jnp.log(p + 1e-12)
    loss_neg = -(1.0 - alpha) * (1.0 - mask) * w_neg * jnp.log(1.0 - p + 1e-07)
    return (jnp.sum(loss_pos) + jnp.sum(loss_neg)) / (num_pos + num_neg + 1e-07)


if __name__ == "__main__":
    key = jax.random.PRNGKey(0)
    k_pred, k_mask = jax.random.split(key)

    B, C, H, W = 2, 1, 16, 16
    pred = jax.random.normal(k_pred, (B, C, H, W), dtype=jnp.float32)
    mask = (jax.random.uniform(k_mask, (B, C, H, W)) > 0.7).astype(jnp.float32)

    loss = focal_loss(pred, mask, gamma=2.0, alpha=0.25)
    loss = jax.block_until_ready(loss)

    ref = _focal_loss_ref(pred, mask, gamma=2.0, alpha=0.25)
    # Slightly loose tolerance: the kernel uses the exact log-sigmoid identity
    # instead of the reference's +1e-12/+1e-7 eps guards inside the logs.
    assert jnp.allclose(loss, ref, rtol=1e-4, atol=1e-6), (loss, ref)

    print("KERNEL_OK")
</pallas_src>

<mosaic_0001>
module attributes {stable_mosaic.version = 11 : i64} {
  func.func @_focal_loss_kernel(%arg0: i32, %arg1: memref<8x128xf32, #tpu.memory_space<vmem>>, %arg2: memref<8x128xf32, #tpu.memory_space<vmem>>, %arg3: memref<8x128xf32, #tpu.memory_space<vmem>>) attributes {dimension_semantics = [#tpu.dimension_semantics<parallel>], iteration_bounds = array<i64: 1>, scalar_prefetch = 0 : i64, scratch_operands = 0 : i64, tpu.core_type = #tpu.core_type<tc>, window_params = [{transform_indices = @transform_0, window_bounds = array<i64: 8, 128>}, {transform_indices = @transform_1, window_bounds = array<i64: 8, 128>}, {transform_indices = @transform_2, window_bounds = array<i64: 8, 128>}]} {
    %c1024_i32 = arith.constant 1024 : i32
    %0 = arith.muli %arg0, %c1024_i32 : i32
    %1 = tpu.iota {dimensions = array<i32: 0>} : vector<8x128xi32>
    %c128_i32 = arith.constant 128 : i32
    %2 = vector.broadcast %c128_i32 : i32 to vector<8x128xi32>
    %3 = arith.muli %1, %2 : vector<8x128xi32>
    %4 = tpu.iota {dimensions = array<i32: 1>} : vector<8x128xi32>
    %5 = arith.addi %3, %4 : vector<8x128xi32>
    %c0 = arith.constant 0 : index
    %c0_0 = arith.constant 0 : index
    %6 = vector.load %arg1[%c0, %c0_0] : memref<8x128xf32, #tpu.memory_space<vmem>>, vector<8x128xf32>
    %c0_1 = arith.constant 0 : index
    %c0_2 = arith.constant 0 : index
    %7 = vector.load %arg2[%c0_1, %c0_2] : memref<8x128xf32, #tpu.memory_space<vmem>>, vector<8x128xf32>
    %8 = math.absf %6 : vector<8x128xf32>
    %cst = arith.constant 0.000000e+00 : f32
    %9 = vector.broadcast %cst : f32 to vector<8x128xf32>
    %10 = arith.subf %9, %8 : vector<8x128xf32>
    %11 = math.exp %10 : vector<8x128xf32>
    %cst_3 = arith.constant 1.000000e+00 : f32
    %12 = vector.broadcast %cst_3 : f32 to vector<8x128xf32>
    %13 = arith.addf %12, %11 : vector<8x128xf32>
    %14 = math.log %13 : vector<8x128xf32>
    %15 = tpu.reciprocal %13 {approx = true} : vector<8x128xf32> -> vector<8x128xf32>
    %16 = arith.mulf %13, %15 : vector<8x128xf32>
    %cst_4 = arith.constant 2.000000e+00 : f32
    %17 = vector.broadcast %cst_4 : f32 to vector<8x128xf32>
    %18 = arith.subf %17, %16 : vector<8x128xf32>
    %19 = arith.mulf %15, %18 : vector<8x128xf32>
    %cst_5 = arith.constant 0.000000e+00 : f32
    %20 = vector.broadcast %cst_5 : f32 to vector<8x128xf32>
    %21 = arith.cmpf oge, %6, %20 : vector<8x128xf32>
    %22 = arith.mulf %11, %19 : vector<8x128xf32>
    %23 = arith.select %21, %19, %22 : vector<8x128xi1>, vector<8x128xf32>
    %24 = arith.select %21, %22, %19 : vector<8x128xi1>, vector<8x128xf32>
    %cst_6 = arith.constant 0.000000e+00 : f32
    %25 = vector.broadcast %cst_6 : f32 to vector<8x128xf32>
    %26 = arith.minimumf %6, %25 : vector<8x128xf32>
    %27 = arith.subf %26, %14 : vector<8x128xf32>
    %cst_7 = arith.constant 0.000000e+00 : f32
    %28 = vector.broadcast %cst_7 : f32 to vector<8x128xf32>
    %29 = arith.maximumf %6, %28 : vector<8x128xf32>
    %cst_8 = arith.constant 0.000000e+00 : f32
    %30 = vector.broadcast %cst_8 : f32 to vector<8x128xf32>
    %31 = arith.subf %30, %29 : vector<8x128xf32>
    %32 = arith.subf %31, %14 : vector<8x128xf32>
    %33 = arith.mulf %24, %24 : vector<8x128xf32>
    %34 = arith.mulf %23, %23 : vector<8x128xf32>
    %cst_9 = arith.constant -2.500000e-01 : f32
    %35 = vector.broadcast %cst_9 : f32 to vector<8x128xf32>
    %36 = arith.mulf %35, %7 : vector<8x128xf32>
    %37 = arith.mulf %36, %27 : vector<8x128xf32>
    %cst_10 = arith.constant 1.000000e+00 : f32
    %38 = vector.broadcast %cst_10 : f32 to vector<8x128xf32>
    %39 = arith.subf %38, %7 : vector<8x128xf32>
    %cst_11 = arith.constant -7.500000e-01 : f32
    %40 = vector.broadcast %cst_11 : f32 to vector<8x128xf32>
    %41 = arith.mulf %40, %39 : vector<8x128xf32>
    %42 = arith.mulf %41, %32 : vector<8x128xf32>
    %43 = arith.mulf %37, %33 : vector<8x128xf32>
    %44 = arith.mulf %42, %34 : vector<8x128xf32>
    %45 = arith.addf %43, %44 : vector<8x128xf32>
    %c0_i32 = arith.constant 0 : i32
    %46 = arith.addi %0, %c0_i32 : i32
    %c512_i32 = arith.constant 512 : i32
    %47 = arith.subi %c512_i32, %46 : i32
    %48 = vector.broadcast %47 : i32 to vector<8x128xi32>
    %49 = arith.cmpi slt, %5, %48 : vector<8x128xi32>
    %cst_12 = arith.constant 0.000000e+00 : f32
    %50 = vector.broadcast %cst_12 : f32 to vector<8x128xf32>
    %51 = arith.select %49, %45, %50 : vector<8x128xi1>, vector<8x128xf32>
    %52 = vector.shape_cast %51 : vector<8x128xf32> to vector<1x8x128xf32>
    %cst_13 = arith.constant dense<0.000000e+00> : vector<8x128xf32>
    %53 = vector.multi_reduction <add>, %52, %cst_13 [0] : vector<1x8x128xf32> to vector<8x128xf32>
    %c0_14 = arith.constant 0 : index
    %c0_15 = arith.constant 0 : index
    %54 = vector.load %arg3[%c0_14, %c0_15] : memref<8x128xf32, #tpu.memory_space<vmem>>, vector<8x128xf32>
    tpu.vector_store %arg3[%c0_14, %c0_15], %53 {strides = array<i32>} : memref<8x128xf32, #tpu.memory_space<vmem>>, vector<8x128xf32>,
    return
  }
  func.func @transform_0(%arg0: i32) -> (i32, i32) {
    %c0_i32 = arith.constant 0 : i32
    %c0_i32_0 = arith.constant 0 : i32
    return %arg0, %c0_i32 : i32, i32
  }
  func.func @transform_1(%arg0: i32) -> (i32, i32) {
    %c0_i32 = arith.constant 0 : i32
    %c0_i32_0 = arith.constant 0 : i32
    return %arg0, %c0_i32 : i32, i32
  }
  func.func @transform_2(%arg0: i32) -> (i32, i32) {
    %c0_i32 = arith.constant 0 : i32
    %c0_i32_0 = arith.constant 0 : i32
    return %arg0, %c0_i32 : i32, i32
  }
}

</mosaic_0001>

<bundles_post_ra>
// kernel: tpu_custom_call.1
= control target key start
LH: loop header
LB: loop body
LE: loop exit
PB: predicated region body
PF: predicated region fallthrough
CT: control target
= control target key end

     0   :  { %7 = vsyncpa [#allocation3], 0  ;;  %s217_s0 = inlined_call_operand.hbm [shape: f32[8,128], index: 0, kind: input, shape index: {}]   ;;  %s218_s1 = inlined_call_operand.hbm [shape: f32[8,128], index: 1, kind: input, shape index: {}]   ;;  %s219_s2 = inlined_call_operand.hbm [shape: f32[8,128], index: 2, kind: output, shape index: {}]  }
   0x1   :  { %8 = vsyncpa [#allocation6], 0 }
   0x2   :  { %9 = vsyncpa [#allocation4], 0  ;;  %s15_s11 = sshll.u32 %s217_s0, 4  ;;  %s190_s12 = smov [#allocation2]   ;;  %s16_s11 = int_to_ptr.hbm [resolvable:$true] %s15_s11 }
   0x3   :  { %s17_s13 = sshll.u32 %s190_s12, 4  ;;  %s26_s16 = sshll.u32 %s218_s1, 4  ;;  %s18_s13 = int_to_ptr.vmem [resolvable:$true] %s17_s13  ;;  %s27_s16 = int_to_ptr.hbm [resolvable:$true] %s26_s16 }
   0x4   :  { %20 = dma.hbm_to_vmem [thread:$0]  %s16_s11, 128, %s18_s13, [#allocation3]  }
   0x5   :  { %s191_s17 = smov [#allocation5]  }
   0x6   :  { %s28_s18 = sshll.u32 %s191_s17, 4  ;;  %s29_s18 = int_to_ptr.vmem [resolvable:$true] %s28_s18 }
   0x7   :  { %31 = dma.hbm_to_vmem [thread:$0]  %s27_s16, 128, %s29_s18, [#allocation6]  }
   0x8   :  { %184 = dma.done.wait [#allocation3], 128  }
   0x9   :  { %185 = vsyncadd [#allocation3], 4294967168 }
   0xa   :  { %186 = dma.done.wait [#allocation6], 128  }
   0xb   :  { %187 = vsyncadd [#allocation6], 4294967168  ;;  %v47_v0 = vld [vmem:[#allocation2] sm:$0xff]  ;;  %v41_v7 = vlaneseq  ;;  %v48_v8 = vld [vmem:[#allocation5] sm:$0xff]  ;;  %s192_s0 = smov [#allocation7]   ;;  %s92_s21 = sshll.u32 %s219_s2, 4  ;;  %s93_s21 = int_to_ptr.hbm [resolvable:$true] %s92_s21 }
   0xc   :  { %v49_v1 = vand.u32 2147483647, %v47_v0  ;;  %v66_v6 = vmax.f32 %v47_v0, 0.0  ;;  %v64_v12 = vmin.f32 %v47_v0, 0.0  ;;  %v73_v14 = vsub.f32 1.0, %v48_v8  ;;  %s90_s1 = sshll.u32 %s192_s0, 4  ;;  %s91_s1 = int_to_ptr.vmem [resolvable:$true] %s90_s1 }
   0xd   :  { %v42_v15 = vshrl.u32 %v41_v7, 7  ;;  %v71_v20 = vmul.f32 -0.25, %v48_v8  ;;  %v45_v23 = vand.u32 127, %v41_v7  ;;  %vm60_vm0 = vcmp.ge.f32.partialorder %v47_v0, 0.0 }
   0xe   :  { %v50_v2 = vsub.f32 0.0, %v49_v1  ;;  %v67_v13 = vsub.f32 0.0, %v66_v6  ;;  %v74_v21 = vmul.f32 -0.75, %v73_v14 }
   0xf   :  { %v43_v22 = vmul.u32 128, %v42_v15 }
  0x10   :  { %v51_v3 = vmul.f32 1.442695, %v50_v2 }
  0x11   :  { %v46_v28 = vadd.s32 %v45_v23, %v43_v22 }
  0x12   :  { %106 = vpow2.f32 %v51_v3 }
  0x13   :  { %vm81_vm1 = vcmp.lt.s32.totalorder %v46_v28, 512 }
  0x18   :  { %v107_v4 = vpop.eup %106 }
  0x19   :  { %v53_v5 = vadd.f32 1.0, %v107_v4 }
  0x1b   :  { %108 = vlog2.f32 %v53_v5 }
  0x1c   :  { %110 = vrcp.f32 %v53_v5 }
  0x21   :  { %v109_v9 = vpop.eup %108 }
  0x22   :  { %v111_v10 = vpop.eup %110  ;;  %v55_v11 = vmul.f32 0.6931472, %v109_v9 }
  0x23   :  { %v57_v16 = vmul.f32 %v111_v10, %v53_v5 }
  0x24   :  { %v65_v18 = vsub.f32 %v64_v12, %v55_v11  ;;  %v68_v19 = vsub.f32 %v67_v13, %v55_v11 }
  0x25   :  { %v58_v17 = vsub.f32 2.0, %v57_v16 }
  0x26   :  { %v72_v26 = vmul.f32 %v71_v20, %v65_v18  ;;  %v75_v27 = vmul.f32 %v74_v21, %v68_v19 }
  0x27   :  { %v59_v24 = vmul.f32 %v111_v10, %v58_v17 }
  0x29   :  { %v61_v25 = vmul.f32 %v107_v4, %v59_v24 }
  0x2b   :  { %v62_v29 = vsel %vm60_vm0, %v59_v24, %v61_v25  ;;  %v63_v30 = vsel %vm60_vm0, %v61_v25, %v59_v24 }
  0x2c   :  { %v69_v31 = vmul.f32 %v63_v30, %v63_v30  ;;  %v70_v32 = vmul.f32 %v62_v29, %v62_v29 }
  0x2e   :  { %v76_v33 = vmul.f32 %v72_v26, %v69_v31  ;;  %v77_v34 = vmul.f32 %v75_v27, %v70_v32 }
  0x30   :  { %v78_v35 = vadd.f32 %v77_v34, %v76_v33 }
  0x32   :  { %v82_v36 = vsel %vm81_vm1, %v78_v35, 0.0 }
  0x33   :  { %84 = vst [vmem:[#allocation7] sm:$0xff] %v82_v36 }
  0x34   :  { %95 = dma.vmem_to_hbm [thread:$0]  %s91_s1, 128, %s93_s21, [#allocation4]  }
  0x35   :  { %188 = dma.done.wait [#allocation4], 128  }
  0x36   :  { %189 = vsyncadd [#allocation4], 4294967168 }
  0x37   :  { %100 = vsyncpa [#allocation3], 1 }
  0x38   :  { %101 = vsyncpa [#allocation6], 1 }
  0x39   :  { %102 = vsyncpa [#allocation4], 1 }

</bundles_post_ra>
